<compile_context>
chip_gen: v5e
topology: v5e:2x2
jax: 0.10.0
libtpu: 0.0.40
codegen_flags: <defaults>
</compile_context>

<pallas_src>
import functools
import types

import jax
import jax.numpy as jnp
from jax import lax
from jax.experimental import pallas as pl
from jax.experimental.pallas import tpu as pltpu

HID = 32             # hidden channels of the synthetic net_audio encoder
TARGET_TILE = 16384  # target flattened columns per grid step (~0.35us/step amortization)


def _round_up(x, m):
    return (x + m - 1) // m * m


def _largest_divisor_le(n, cap):
    cap = max(1, min(n, cap))
    for d in range(cap, 0, -1):
        if n % d == 0:
            return d
    return 1


def _make_echo_kernel(wpad, l_real):
    """Fused (3x3 conv + bias + ReLU) -> (1x1 head + bias + sigmoid + scale)."""

    def kernel(scale_ref, x_ref, w1_ref, b1_ref, w2_ref, b2_ref, o_ref):
        # scale_ref: [1, 1]        f32  (SMEM)  max_depth / max_spec
        # x_ref:     [C, LG]       bf16 flattened zero-padded images + halo zeros
        # w1_ref:    [9, HID, C]   bf16 (k = kh*3 + kw)
        # b1_ref:    [HID, 1]      f32
        # w2_ref:    [NO, HID]     bf16
        # b2_ref:    [NO, 1]       f32
        # o_ref:     [NO, LG]      f32  (real outputs in the first l_real cols)
        scale = scale_ref[0, 0]
        # Fused im2col: each conv tap (kh, kw) is a statically shifted window
        # of the flattened padded image block; contract over the C channels on
        # the MXU and accumulate in f32.  No HBM patch duplication.
        acc = jnp.zeros((HID, l_real), jnp.float32)
        for k in range(9):
            kh, kw = k // 3, k % 3
            shift = kh * wpad + kw
            xs = x_ref[:, shift:shift + l_real]            # [C, l_real] bf16
            acc = acc + jnp.dot(w1_ref[k], xs,
                                preferred_element_type=jnp.float32)
        # Epilogue in f32 (v5e VPU/EUP have no bf16 path); bf16 only for MXU.
        h = jnp.maximum(acc + b1_ref[...], 0.0).astype(jnp.bfloat16)
        y = jnp.dot(w2_ref[...], h, preferred_element_type=jnp.float32)
        y = jax.nn.sigmoid(y + b2_ref[...]) * scale
        o_ref[:, :l_real] = y
        n_out, lg = o_ref.shape
        # halo columns are sliced off outside; zero them for determinism
        o_ref[:, l_real:] = jnp.zeros((n_out, lg - l_real), jnp.float32)

    return kernel


@functools.partial(jax.jit, static_argnames=("wpad", "l_real"))
def _run_net_pallas(scale, xg, w1p, b1, w2, b2, *, wpad, l_real):
    n_grp, c, lg = xg.shape
    n_out = w2.shape[0]
    kernel = _make_echo_kernel(wpad, l_real)

    flops = 2 * n_grp * l_real * (9 * c * HID + HID * n_out)
    bytes_accessed = ((xg.size + w1p.size + w2.size) * 2
                      + (b1.size + b2.size + 1) * 4
                      + n_grp * n_out * lg * 4)

    return pl.pallas_call(
        kernel,
        out_shape=jax.ShapeDtypeStruct((n_grp, n_out, lg), jnp.float32),
        grid=(n_grp,),
        in_specs=[
            # runtime scale scalar lives in SMEM -> no recompile per value
            pl.BlockSpec(memory_space=pltpu.MemorySpace.SMEM),
            pl.BlockSpec((None, c, lg), lambda g: (g, 0, 0)),   # streamed input
            pl.BlockSpec((9, HID, c), lambda g: (0, 0, 0)),     # resident weights
            pl.BlockSpec((HID, 1), lambda g: (0, 0)),
            pl.BlockSpec((n_out, HID), lambda g: (0, 0)),
            pl.BlockSpec((n_out, 1), lambda g: (0, 0)),
        ],
        out_specs=pl.BlockSpec((None, n_out, lg), lambda g: (g, 0, 0)),
        compiler_params=pltpu.CompilerParams(
            dimension_semantics=("parallel",)),
        cost_estimate=pl.CostEstimate(
            flops=flops,
            transcendentals=n_grp * n_out * l_real,
            bytes_accessed=bytes_accessed),
    )(scale, xg, w1p, b1, w2, b2)


class NetAudio:
    """Synthetic echo->depth/spec CNN; both layers run fused in one Pallas kernel."""

    def __init__(self, in_ch, key):
        k1, k2, k3, k4, k5, k6 = jax.random.split(key, 6)
        self.in_ch = in_ch
        # conv1: 3x3, pad 1 (OIHW like torch.nn.Conv2d)
        self.w1 = jax.random.normal(k1, (HID, in_ch, 3, 3), jnp.float32) * 0.1
        self.b1 = jax.random.normal(k2, (HID, 1), jnp.float32) * 0.1
        # packed for the kernel: [9, HID, C], k = kh*3 + kw
        self.w1p = (jnp.transpose(self.w1, (2, 3, 0, 1))
                    .reshape(9, HID, in_ch).astype(jnp.bfloat16))
        # depth head: 1 output channel; spec head: in_ch output channels.
        # Per-mode shapes (no zero-padded output rows) -> one extra Mosaic
        # compile, 4-8x less writeback / sigmoid work.
        self.heads = {}
        for name, n_out, kw_, kb_ in (("depth", 1, k3, k4), ("spec", in_ch, k5, k6)):
            w2 = jax.random.normal(kw_, (n_out, HID), jnp.float32) * 0.1
            b2 = jax.random.normal(kb_, (n_out, 1), jnp.float32) * 0.1
            self.heads[name] = (w2.astype(jnp.bfloat16), b2, w2, n_out)

    def _prep_input(self, x):
        B, C, H, W = x.shape
        wpad = W + 2                      # conv pad=1 on both sides; no lane pad
        l_img = (H + 2) * wpad            # flattened padded image length
        # images per grid step: tiles near TARGET_TILE columns, but keep >= 2
        # "parallel" grid steps when possible (v7x has 2 TensorCores).
        g_cap = min(max(1, TARGET_TILE // l_img), max(1, B // 2))
        grp = _largest_divisor_le(B, g_cap)
        l_real = grp * l_img
        halo = 2 * wpad + 2               # largest fused-im2col shift
        lg = _round_up(l_real + halo, 128)
        # bf16 FIRST, then one spatial pad + a small trailing halo pad
        # (vs. the old 9x-duplicated f32 im2col round-tripped through HBM).
        xp = jnp.pad(x.astype(jnp.bfloat16),
                     ((0, 0), (0, 0), (1, 1), (1, 1)))        # [B, C, H+2, W+2]
        xg = (xp.reshape(B // grp, grp, C, l_img)
                .transpose(0, 2, 1, 3)
                .reshape(B // grp, C, l_real))
        xg = jnp.pad(xg, ((0, 0), (0, 0), (0, lg - l_real)))
        return xg, wpad, l_real, grp

    def __call__(self, x, mode, scale):
        B, C, H, W = x.shape
        xg, wpad, l_real, grp = self._prep_input(x)
        w2_bf, b2, _, n_out = self.heads[mode]
        scale_arr = jnp.full((1, 1), scale, jnp.float32)
        out = _run_net_pallas(scale_arr, xg, self.w1p, self.b1, w2_bf, b2,
                              wpad=wpad, l_real=l_real)       # [B//grp, n_out, LG]
        out = out[:, :, :l_real].reshape(B // grp, n_out, grp, H + 2, wpad)
        out = out[:, :, :, :H, :W]                            # drop pad rows/cols
        out = out.transpose(0, 2, 1, 3, 4).reshape(B, n_out, H, W)
        return out                                            # NCHW

    def reference(self, x, mode, scale):
        # Pure-JAX f32 reference (independent conv path) for correctness checks.
        _, b2, w2, n_out = self.heads[mode]
        h = lax.conv_general_dilated(
            x, self.w1, window_strides=(1, 1), padding=((1, 1), (1, 1)),
            dimension_numbers=("NCHW", "OIHW", "NCHW"))
        h = jnp.maximum(h + self.b1.reshape(1, HID, 1, 1), 0.0)
        y = jnp.einsum("oc,bchw->bohw", w2, h) + b2.reshape(1, n_out, 1, 1)
        return jax.nn.sigmoid(y) * scale


class EchoBasedModel:
    def name(self):
        return "EchoBasedModel"

    def __init__(self, nets, opt):
        self.opt = opt
        self.net_audio = nets

    def forward(self, inputs, depth_or_spec):
        audio_input = inputs["audio"]
        depth_gt = inputs["depth"]
        if depth_or_spec == "depth":
            # scaling by opt.max_depth is fused into the Pallas kernel
            pre_depth = self.net_audio(audio_input, "depth", self.opt.max_depth)
            return {"pre_depth": pre_depth, "depth_gt": depth_gt}
        elif depth_or_spec == "spec":
            pre_spec = self.net_audio(audio_input, "spec", self.opt.max_spec)
            return {"pre_spec": pre_spec}


if __name__ == "__main__":
    key = jax.random.PRNGKey(0)
    k_audio, k_depth, k_net = jax.random.split(key, 3)

    B, C, H, W = 2, 2, 16, 16   # stereo echo spectrogram, small spatial size
    audio = jax.random.normal(k_audio, (B, C, H, W), jnp.float32)
    depth_gt = jax.random.uniform(k_depth, (B, 1, H, W), jnp.float32)

    opt = types.SimpleNamespace(max_depth=10.0, max_spec=1.0)
    net = NetAudio(C, k_net)
    model = EchoBasedModel(net, opt)

    # depth branch
    out_d = model.forward({"audio": audio, "depth": depth_gt}, "depth")
    pre_depth = jax.block_until_ready(out_d["pre_depth"])
    ref_depth = net.reference(audio, "depth", opt.max_depth)
    assert pre_depth.shape == (B, 1, H, W)
    assert jnp.allclose(pre_depth, ref_depth, atol=3e-2, rtol=3e-2), \
        float(jnp.max(jnp.abs(pre_depth - ref_depth)))

    # spec branch
    out_s = model.forward({"audio": audio, "depth": depth_gt}, "spec")
    pre_spec = jax.block_until_ready(out_s["pre_spec"])
    ref_spec = net.reference(audio, "spec", opt.max_spec)
    assert pre_spec.shape == (B, C, H, W)
    assert jnp.allclose(pre_spec, ref_spec, atol=3e-2, rtol=3e-2), \
        float(jnp.max(jnp.abs(pre_spec - ref_spec)))

    print("KERNEL_OK")
</pallas_src>

<mosaic_0001>
module attributes {stable_mosaic.version = 11 : i64} {
  func.func @kernel(%arg0: i32, %arg1: memref<1x1xf32, #tpu.memory_space<smem>>, %arg2: memref<1x2x384xbf16, #tpu.memory_space<vmem>>, %arg3: memref<9x32x2xbf16, #tpu.memory_space<vmem>>, %arg4: memref<32x1xf32, #tpu.memory_space<vmem>>, %arg5: memref<1x32xbf16, #tpu.memory_space<vmem>>, %arg6: memref<1x1xf32, #tpu.memory_space<vmem>>, %arg7: memref<1x1x384xf32, #tpu.memory_space<vmem>>) attributes {dimension_semantics = [#tpu.dimension_semantics<parallel>], iteration_bounds = array<i64: 2>, scalar_prefetch = 0 : i64, scratch_operands = 0 : i64, tpu.core_type = #tpu.core_type<tc>, window_params = [{transform_indices = @transform_0, window_bounds = array<i64: 1, 1>}, {transform_indices = @transform_1, window_bounds = array<i64: 1, 2, 384>}, {pipeline_mode = #tpu.pipeline_mode<synchronous>, transform_indices = @transform_2, window_bounds = array<i64: 9, 32, 2>}, {pipeline_mode = #tpu.pipeline_mode<synchronous>, transform_indices = @transform_3, window_bounds = array<i64: 32, 1>}, {pipeline_mode = #tpu.pipeline_mode<synchronous>, transform_indices = @transform_4, window_bounds = array<i64: 1, 32>}, {pipeline_mode = #tpu.pipeline_mode<synchronous>, transform_indices = @transform_5, window_bounds = array<i64: 1, 1>}, {transform_indices = @transform_6, window_bounds = array<i64: 1, 1, 384>}]} {
    %c0 = arith.constant 0 : index
    %c0_0 = arith.constant 0 : index
    %0 = memref.load %arg1[%c0, %c0_0] : memref<1x1xf32, #tpu.memory_space<smem>>
    %cst = arith.constant 0.000000e+00 : f32
    %1 = vector.broadcast %cst : f32 to vector<32x324xf32>
    %c0_1 = arith.constant 0 : index
    %c0_2 = arith.constant 0 : index
    %c0_3 = arith.constant 0 : index
    %2 = vector.load %arg2[%c0_1, %c0_2, %c0_3] : memref<1x2x384xbf16, #tpu.memory_space<vmem>>, vector<1x2x324xbf16>
    %3 = vector.shape_cast %2 : vector<1x2x324xbf16> to vector<2x324xbf16>
    %c0_4 = arith.constant 0 : index
    %c0_5 = arith.constant 0 : index
    %c0_6 = arith.constant 0 : index
    %4 = vector.load %arg3[%c0_4, %c0_5, %c0_6] : memref<9x32x2xbf16, #tpu.memory_space<vmem>>, vector<1x32x2xbf16>
    %5 = vector.shape_cast %4 : vector<1x32x2xbf16> to vector<32x2xbf16>
    %cst_7 = arith.constant dense<0.000000e+00> : vector<32x324xf32>
    %6 = tpu.matmul %5, %3, %cst_7 {dimension_numbers = #tpu.dot_dimension_numbers<[1], [0], [0], [1], [0, 0, 1, 1], [], []>} : vector<32x2xbf16>, vector<2x324xbf16>, vector<32x324xf32> -> vector<32x324xf32>
    %7 = arith.addf %1, %6 : vector<32x324xf32>
    %c0_8 = arith.constant 0 : index
    %c0_9 = arith.constant 0 : index
    %c1 = arith.constant 1 : index
    %8 = vector.load %arg2[%c0_8, %c0_9, %c1] : memref<1x2x384xbf16, #tpu.memory_space<vmem>>, vector<1x2x324xbf16>
    %9 = vector.shape_cast %8 : vector<1x2x324xbf16> to vector<2x324xbf16>
    %c1_10 = arith.constant 1 : index
    %c0_11 = arith.constant 0 : index
    %c0_12 = arith.constant 0 : index
    %10 = vector.load %arg3[%c1_10, %c0_11, %c0_12] : memref<9x32x2xbf16, #tpu.memory_space<vmem>>, vector<1x32x2xbf16>
    %11 = vector.shape_cast %10 : vector<1x32x2xbf16> to vector<32x2xbf16>
    %cst_13 = arith.constant dense<0.000000e+00> : vector<32x324xf32>
    %12 = tpu.matmul %11, %9, %cst_13 {dimension_numbers = #tpu.dot_dimension_numbers<[1], [0], [0], [1], [0, 0, 1, 1], [], []>} : vector<32x2xbf16>, vector<2x324xbf16>, vector<32x324xf32> -> vector<32x324xf32>
    %13 = arith.addf %7, %12 : vector<32x324xf32>
    %c0_14 = arith.constant 0 : index
    %c0_15 = arith.constant 0 : index
    %c2 = arith.constant 2 : index
    %14 = vector.load %arg2[%c0_14, %c0_15, %c2] : memref<1x2x384xbf16, #tpu.memory_space<vmem>>, vector<1x2x324xbf16>
    %15 = vector.shape_cast %14 : vector<1x2x324xbf16> to vector<2x324xbf16>
    %c2_16 = arith.constant 2 : index
    %c0_17 = arith.constant 0 : index
    %c0_18 = arith.constant 0 : index
    %16 = vector.load %arg3[%c2_16, %c0_17, %c0_18] : memref<9x32x2xbf16, #tpu.memory_space<vmem>>, vector<1x32x2xbf16>
    %17 = vector.shape_cast %16 : vector<1x32x2xbf16> to vector<32x2xbf16>
    %cst_19 = arith.constant dense<0.000000e+00> : vector<32x324xf32>
    %18 = tpu.matmul %17, %15, %cst_19 {dimension_numbers = #tpu.dot_dimension_numbers<[1], [0], [0], [1], [0, 0, 1, 1], [], []>} : vector<32x2xbf16>, vector<2x324xbf16>, vector<32x324xf32> -> vector<32x324xf32>
    %19 = arith.addf %13, %18 : vector<32x324xf32>
    %c0_20 = arith.constant 0 : index
    %c0_21 = arith.constant 0 : index
    %c18 = arith.constant 18 : index
    %20 = vector.load %arg2[%c0_20, %c0_21, %c18] : memref<1x2x384xbf16, #tpu.memory_space<vmem>>, vector<1x2x324xbf16>
    %21 = vector.shape_cast %20 : vector<1x2x324xbf16> to vector<2x324xbf16>
    %c3 = arith.constant 3 : index
    %c0_22 = arith.constant 0 : index
    %c0_23 = arith.constant 0 : index
    %22 = vector.load %arg3[%c3, %c0_22, %c0_23] : memref<9x32x2xbf16, #tpu.memory_space<vmem>>, vector<1x32x2xbf16>
    %23 = vector.shape_cast %22 : vector<1x32x2xbf16> to vector<32x2xbf16>
    %cst_24 = arith.constant dense<0.000000e+00> : vector<32x324xf32>
    %24 = tpu.matmul %23, %21, %cst_24 {dimension_numbers = #tpu.dot_dimension_numbers<[1], [0], [0], [1], [0, 0, 1, 1], [], []>} : vector<32x2xbf16>, vector<2x324xbf16>, vector<32x324xf32> -> vector<32x324xf32>
    %25 = arith.addf %19, %24 : vector<32x324xf32>
    %c0_25 = arith.constant 0 : index
    %c0_26 = arith.constant 0 : index
    %c19 = arith.constant 19 : index
    %26 = vector.load %arg2[%c0_25, %c0_26, %c19] : memref<1x2x384xbf16, #tpu.memory_space<vmem>>, vector<1x2x324xbf16>
    %27 = vector.shape_cast %26 : vector<1x2x324xbf16> to vector<2x324xbf16>
    %c4 = arith.constant 4 : index
    %c0_27 = arith.constant 0 : index
    %c0_28 = arith.constant 0 : index
    %28 = vector.load %arg3[%c4, %c0_27, %c0_28] : memref<9x32x2xbf16, #tpu.memory_space<vmem>>, vector<1x32x2xbf16>
    %29 = vector.shape_cast %28 : vector<1x32x2xbf16> to vector<32x2xbf16>
    %cst_29 = arith.constant dense<0.000000e+00> : vector<32x324xf32>
    %30 = tpu.matmul %29, %27, %cst_29 {dimension_numbers = #tpu.dot_dimension_numbers<[1], [0], [0], [1], [0, 0, 1, 1], [], []>} : vector<32x2xbf16>, vector<2x324xbf16>, vector<32x324xf32> -> vector<32x324xf32>
    %31 = arith.addf %25, %30 : vector<32x324xf32>
    %c0_30 = arith.constant 0 : index
    %c0_31 = arith.constant 0 : index
    %c20 = arith.constant 20 : index
    %32 = vector.load %arg2[%c0_30, %c0_31, %c20] : memref<1x2x384xbf16, #tpu.memory_space<vmem>>, vector<1x2x324xbf16>
    %33 = vector.shape_cast %32 : vector<1x2x324xbf16> to vector<2x324xbf16>
    %c5 = arith.constant 5 : index
    %c0_32 = arith.constant 0 : index
    %c0_33 = arith.constant 0 : index
    %34 = vector.load %arg3[%c5, %c0_32, %c0_33] : memref<9x32x2xbf16, #tpu.memory_space<vmem>>, vector<1x32x2xbf16>
    %35 = vector.shape_cast %34 : vector<1x32x2xbf16> to vector<32x2xbf16>
    %cst_34 = arith.constant dense<0.000000e+00> : vector<32x324xf32>
    %36 = tpu.matmul %35, %33, %cst_34 {dimension_numbers = #tpu.dot_dimension_numbers<[1], [0], [0], [1], [0, 0, 1, 1], [], []>} : vector<32x2xbf16>, vector<2x324xbf16>, vector<32x324xf32> -> vector<32x324xf32>
    %37 = arith.addf %31, %36 : vector<32x324xf32>
    %c0_35 = arith.constant 0 : index
    %c0_36 = arith.constant 0 : index
    %c36 = arith.constant 36 : index
    %38 = vector.load %arg2[%c0_35, %c0_36, %c36] : memref<1x2x384xbf16, #tpu.memory_space<vmem>>, vector<1x2x324xbf16>
    %39 = vector.shape_cast %38 : vector<1x2x324xbf16> to vector<2x324xbf16>
    %c6 = arith.constant 6 : index
    %c0_37 = arith.constant 0 : index
    %c0_38 = arith.constant 0 : index
    %40 = vector.load %arg3[%c6, %c0_37, %c0_38] : memref<9x32x2xbf16, #tpu.memory_space<vmem>>, vector<1x32x2xbf16>
    %41 = vector.shape_cast %40 : vector<1x32x2xbf16> to vector<32x2xbf16>
    %cst_39 = arith.constant dense<0.000000e+00> : vector<32x324xf32>
    %42 = tpu.matmul %41, %39, %cst_39 {dimension_numbers = #tpu.dot_dimension_numbers<[1], [0], [0], [1], [0, 0, 1, 1], [], []>} : vector<32x2xbf16>, vector<2x324xbf16>, vector<32x324xf32> -> vector<32x324xf32>
    %43 = arith.addf %37, %42 : vector<32x324xf32>
    %c0_40 = arith.constant 0 : index
    %c0_41 = arith.constant 0 : index
    %c37 = arith.constant 37 : index
    %44 = vector.load %arg2[%c0_40, %c0_41, %c37] : memref<1x2x384xbf16, #tpu.memory_space<vmem>>, vector<1x2x324xbf16>
    %45 = vector.shape_cast %44 : vector<1x2x324xbf16> to vector<2x324xbf16>
    %c7 = arith.constant 7 : index
    %c0_42 = arith.constant 0 : index
    %c0_43 = arith.constant 0 : index
    %46 = vector.load %arg3[%c7, %c0_42, %c0_43] : memref<9x32x2xbf16, #tpu.memory_space<vmem>>, vector<1x32x2xbf16>
    %47 = vector.shape_cast %46 : vector<1x32x2xbf16> to vector<32x2xbf16>
    %cst_44 = arith.constant dense<0.000000e+00> : vector<32x324xf32>
    %48 = tpu.matmul %47, %45, %cst_44 {dimension_numbers = #tpu.dot_dimension_numbers<[1], [0], [0], [1], [0, 0, 1, 1], [], []>} : vector<32x2xbf16>, vector<2x324xbf16>, vector<32x324xf32> -> vector<32x324xf32>
    %49 = arith.addf %43, %48 : vector<32x324xf32>
    %c0_45 = arith.constant 0 : index
    %c0_46 = arith.constant 0 : index
    %c38 = arith.constant 38 : index
    %50 = vector.load %arg2[%c0_45, %c0_46, %c38] : memref<1x2x384xbf16, #tpu.memory_space<vmem>>, vector<1x2x324xbf16>
    %51 = vector.shape_cast %50 : vector<1x2x324xbf16> to vector<2x324xbf16>
    %c8 = arith.constant 8 : index
    %c0_47 = arith.constant 0 : index
    %c0_48 = arith.constant 0 : index
    %52 = vector.load %arg3[%c8, %c0_47, %c0_48] : memref<9x32x2xbf16, #tpu.memory_space<vmem>>, vector<1x32x2xbf16>
    %53 = vector.shape_cast %52 : vector<1x32x2xbf16> to vector<32x2xbf16>
    %cst_49 = arith.constant dense<0.000000e+00> : vector<32x324xf32>
    %54 = tpu.matmul %53, %51, %cst_49 {dimension_numbers = #tpu.dot_dimension_numbers<[1], [0], [0], [1], [0, 0, 1, 1], [], []>} : vector<32x2xbf16>, vector<2x324xbf16>, vector<32x324xf32> -> vector<32x324xf32>
    %55 = arith.addf %49, %54 : vector<32x324xf32>
    %c0_50 = arith.constant 0 : index
    %c0_51 = arith.constant 0 : index
    %56 = vector.load %arg4[%c0_50, %c0_51] : memref<32x1xf32, #tpu.memory_space<vmem>>, vector<32x1xf32>
    %57 = vector.broadcast %56 : vector<32x1xf32> to vector<32x324xf32>
    %58 = arith.addf %55, %57 : vector<32x324xf32>
    %cst_52 = arith.constant 0.000000e+00 : f32
    %59 = vector.broadcast %cst_52 : f32 to vector<32x324xf32>
    %60 = arith.maximumf %58, %59 : vector<32x324xf32>
    %61 = arith.truncf %60 : vector<32x324xf32> to vector<32x324xbf16>
    %c0_53 = arith.constant 0 : index
    %c0_54 = arith.constant 0 : index
    %62 = vector.load %arg5[%c0_53, %c0_54] : memref<1x32xbf16, #tpu.memory_space<vmem>>, vector<1x32xbf16>
    %cst_55 = arith.constant dense<0.000000e+00> : vector<1x324xf32>
    %63 = tpu.matmul %62, %61, %cst_55 {dimension_numbers = #tpu.dot_dimension_numbers<[1], [0], [0], [1], [0, 0, 1, 1], [], []>} : vector<1x32xbf16>, vector<32x324xbf16>, vector<1x324xf32> -> vector<1x324xf32>
    %c0_56 = arith.constant 0 : index
    %c0_57 = arith.constant 0 : index
    %64 = vector.load %arg6[%c0_56, %c0_57] : memref<1x1xf32, #tpu.memory_space<vmem>>, vector<1x1xf32>
    %65 = vector.broadcast %64 : vector<1x1xf32> to vector<1x324xf32>
    %66 = arith.addf %63, %65 : vector<1x324xf32>
    %67 = arith.negf %66 : vector<1x324xf32>
    %68 = math.exp %67 : vector<1x324xf32>
    %cst_58 = arith.constant 1.000000e+00 : f32
    %69 = vector.broadcast %cst_58 : f32 to vector<1x324xf32>
    %70 = arith.addf %69, %68 : vector<1x324xf32>
    %71 = arith.divf %69, %70 : vector<1x324xf32>
    %72 = vector.broadcast %0 : f32 to vector<1x324xf32>
    %73 = arith.mulf %71, %72 : vector<1x324xf32>
    %c0_59 = arith.constant 0 : index
    %c0_60 = arith.constant 0 : index
    %c0_61 = arith.constant 0 : index
    %74 = vector.load %arg7[%c0_59, %c0_60, %c0_61] : memref<1x1x384xf32, #tpu.memory_space<vmem>>, vector<1x1x324xf32>
    %75 = vector.shape_cast %74 : vector<1x1x324xf32> to vector<1x324xf32>
    %76 = vector.shape_cast %73 : vector<1x324xf32> to vector<1x1x324xf32>
    tpu.vector_store %arg7[%c0_59, %c0_60, %c0_61], %76 {strides = array<i32>} : memref<1x1x384xf32, #tpu.memory_space<vmem>>, vector<1x1x324xf32>,
    %cst_62 = arith.constant 0.000000e+00 : f32
    %77 = vector.broadcast %cst_62 : f32 to vector<1x60xf32>
    %c0_63 = arith.constant 0 : index
    %c0_64 = arith.constant 0 : index
    %c324 = arith.constant 324 : index
    %78 = vector.load %arg7[%c0_63, %c0_64, %c324] : memref<1x1x384xf32, #tpu.memory_space<vmem>>, vector<1x1x60xf32>
    %79 = vector.shape_cast %78 : vector<1x1x60xf32> to vector<1x60xf32>
    %80 = vector.shape_cast %77 : vector<1x60xf32> to vector<1x1x60xf32>
    tpu.vector_store %arg7[%c0_63, %c0_64, %c324], %80 {strides = array<i32>} : memref<1x1x384xf32, #tpu.memory_space<vmem>>, vector<1x1x60xf32>,
    return
  }
  func.func @transform_0(%arg0: i32) -> (i32, i32) {
    %c0_i32 = arith.constant 0 : i32
    %c0_i32_0 = arith.constant 0 : i32
    %c0_i32_1 = arith.constant 0 : i32
    return %c0_i32, %c0_i32_0 : i32, i32
  }
  func.func @transform_1(%arg0: i32) -> (i32, i32, i32) {
    %c0_i32 = arith.constant 0 : i32
    %c0_i32_0 = arith.constant 0 : i32
    %c0_i32_1 = arith.constant 0 : i32
    return %arg0, %c0_i32, %c0_i32_0 : i32, i32, i32
  }
  func.func @transform_2(%arg0: i32) -> (i32, i32, i32) {
    %c0_i32 = arith.constant 0 : i32
    %c0_i32_0 = arith.constant 0 : i32
    %c0_i32_1 = arith.constant 0 : i32
    %c0_i32_2 = arith.constant 0 : i32
    return %c0_i32, %c0_i32_0, %c0_i32_1 : i32, i32, i32
  }
  func.func @transform_3(%arg0: i32) -> (i32, i32) {
    %c0_i32 = arith.constant 0 : i32
    %c0_i32_0 = arith.constant 0 : i32
    %c0_i32_1 = arith.constant 0 : i32
    return %c0_i32, %c0_i32_0 : i32, i32
  }
  func.func @transform_4(%arg0: i32) -> (i32, i32) {
    %c0_i32 = arith.constant 0 : i32
    %c0_i32_0 = arith.constant 0 : i32
    %c0_i32_1 = arith.constant 0 : i32
    return %c0_i32, %c0_i32_0 : i32, i32
  }
  func.func @transform_5(%arg0: i32) -> (i32, i32) {
    %c0_i32 = arith.constant 0 : i32
    %c0_i32_0 = arith.constant 0 : i32
    %c0_i32_1 = arith.constant 0 : i32
    return %c0_i32, %c0_i32_0 : i32, i32
  }
  func.func @transform_6(%arg0: i32) -> (i32, i32, i32) {
    %c0_i32 = arith.constant 0 : i32
    %c0_i32_0 = arith.constant 0 : i32
    %c0_i32_1 = arith.constant 0 : i32
    return %arg0, %c0_i32, %c0_i32_0 : i32, i32, i32
  }
}

</mosaic_0001>

<bundles_post_ra>
// kernel: _run_net_pallas.1
= control target key start
LH: loop header
LB: loop body
LE: loop exit
PB: predicated region body
PF: predicated region fallthrough
CT: control target
= control target key end

     0   :  { %s2265_s0 = inlined_call_operand.<no memory space> [shape: f32[1,1], index: 0, kind: input, shape index: {}]   ;;  %s2266_s1 = inlined_call_operand.vmem [shape: bf16[2,2,384], index: 1, kind: input, shape index: {}]   ;;  %s2267_s2 = inlined_call_operand.vmem [shape: bf16[9,32,2], index: 2, kind: input, shape index: {}]   ;;  %s2268_s3 = inlined_call_operand.vmem [shape: f32[32,1], index: 3, kind: input, shape index: {}]   ;;  %s2269_s4 = inlined_call_operand.vmem [shape: bf16[1,32], index: 4, kind: input, shape index: {}]   ;;  %s2270_s5 = inlined_call_operand.<no memory space> [shape: f32[1,1], index: 5, kind: input, shape index: {}]   ;;  %s2271_s6 = inlined_call_operand.hbm [shape: f32[2,1,384], index: 6, kind: output, shape index: {}]  }
   0x1   :  { %11 = sst [smem:[#allocation2]] %s2265_s0  ;;  %v12_v0 = vstv %s2270_s5 }
   0x2   :  { %13 = vst [vmem:[#allocation3] sm:$0x1] %v12_v0 }
   0x3   :  { %14 = vsyncpa [#allocation5], 0 }
   0x4   :  { %16 = vsyncpa [#allocation5 + $0x1], 0  ;;  %s1894_s25 = smov 0   ;;  %s1896_s26 = smov 0  }
   0x5   :  { %s1898_s27 = smov 0   ;;  %s1900_s28 = smov 0  }
   0x6 LB: > { %s1915_s0 = sadd.s32 4294967295, %s1841_s28   ;;  %s1524_s5 = sadd.s32 4294967294, %s1841_s28   ;;  %s1841_s28 = sphi %s1900_s28, %s2285_s28   ;;  %s1837_s27 = sphi %s1898_s27, %s2284_s27   ;;  %s1833_s26 = sphi %s1896_s26, %s2283_s26   ;;  %s1829_s25 = sphi %s1894_s25, %s2282_s25  }
   0x7   : > { %s1919_s29 = sadd.s32 1, %s1841_s28   ;;  %s160_s30 = sadd.s32 1, %s1837_s27 }
   0x8   : > { %s157_s7 = ssub.s32 %s1841_s28, %s1919_s29  ;;  %p170_p0 = scmp.ne.s32.totalorder %s1837_s27, %s1833_s26 }
   0x9   : > { %p158_p1 = scmp.eq.s32.totalorder %s157_s7, 0  ;;  %p171_p2 = scmp.eq.s32.totalorder %s1915_s0, 1 }
   0xa   : > { %p176_p3 = scmp.ne.s32.totalorder %s1833_s26, %s1829_s25  ;;  %p177_p4 = scmp.eq.s32.totalorder %s1524_s5, 1 }
   0xb   : > { %s1930_s8 = scalar_select %p158_p1, %s1837_s27, %s160_s30  }
   0xc   : > { %p1932_p5 = por %p171_p2, %p170_p0  ;;  %p1936_p6 = por %p177_p4, %p176_p3 }
   0xd   : > { %p1527_p7 = scmp.ge.s32.totalorder %s1841_s28, 1  ;;  %p217_p8 = scmp.lt.s32.totalorder %s1841_s28, 3 }
   0xf   : > { %p218_p9 = pnand %p1527_p7, %p217_p8 }
  0x10   : > { %p246_p10 = scmp.lt.s32.totalorder (!%p218_p9), %s1915_s0, 1  ;;  %s1843_s16 = smov (!%p218_p9), 127  }
  0x11   : > { %221 = sbr.rel (%p218_p9) target bundleno = 709 (0x2c5), region = 44  ;;  %s1844_s17 = smov (!%p218_p9), 126  }
  0x12   : > { %s1845_s18 = smov (!%p218_p9), 110   ;;  %s1846_s19 = smov (!%p218_p9), 109  }
  0x13   : > { %s1847_s20 = smov (!%p218_p9), 108   ;;  %s1848_s23 = smov (!%p218_p9), 92  }
  0x14   : > { %s1849_s13 = smov (!%p218_p9), 91   ;;  %s1714_s22 = smul.u32 (!%p218_p9), 3, %s1915_s0 }
  0x16   : > { %s247_s11 = scalar_select %p246_p10, %s1915_s0, 1  ;;  %vm296_vm0 = vcmask 1040384   ;;  %v1963_v26 = vld [vmem:[%s2267_s2] sm:$0xff]  ;;  %vm289_vm1 = vcmask 15360   ;;  %v1970_v29 = vld [vmem:[%s2267_s2 + $0x8] sm:$0xff]  ;;  %v1696_v34 = vld [vmem:[%s2267_s2 + $0x10] sm:$0xff] }
  0x17   : > { %vm476_vm2 = vcmask 1031168   ;;  %vm286_vm3 = vcmask 1039360   ;;  %v1985_v41 = vld [vmem:[%s2267_s2 + $0x20] sm:$0xff]  ;;  %v1697_v51 = vld [vmem:[%s2267_s2 + $0x18] sm:$0xff]  ;;  %v2007_v55 = vld [vmem:[%s2267_s2 + $0x28] sm:$0xff]  ;;  %vm593_vm4 = vcmask 900096   ;;  %s1460_s0 = scalar_lea.hbm %s2271_s6, %s1714_s22 }
  0x18   : > { %s1713_s12 = smul.u32 3, %s247_s11  ;;  %vm710_vm5 = vcmask 891904   ;;  %vm827_vm6 = vcmask 883712   ;;  %vm944_vm7 = vcmask 752640   ;;  %vm1061_vm8 = vcmask 744448   ;;  %s1464_s7 = sshll.u32 %s1460_s0, 4  ;;  %s1465_s7 = int_to_ptr.hbm [resolvable:$true] %s1464_s7 }
  0x19   : > { %vm1178_vm9 = vcmask 736256   ;;  %vm1327_vm10 = vcmask 261120  }
  0x1a   : > { %s1947_s15 = scalar_lea.vmem %s2266_s1, %s1713_s12  ;;  %s1793_s12 = sshra.s32 %s1465_s7, 4  ;;  %s1794_s12 = int_to_ptr.hbm [resolvable:$true] %s1793_s12 }
  0x1b   : > { %v252_v1 = vld [vmem:[%s1947_s15] sm:$0x7]  ;;  %p1800_p0 = scmp.lt.s32.totalorder %s1794_s12, %s2271_s6 }
  0x1c   : > { %273 = vst [vmem:[#allocation1] ss:$9 sm:$0xff] %v252_v1  ;;  %v446_v5 = vld [vmem:[%s1947_s15] sm:$0x7] }
  0x1d   : > { %v563_v9 = vld [vmem:[%s1947_s15] sm:$0x7] }
  0x1e   : > { %v680_v13 = vld [vmem:[%s1947_s15] sm:$0x7] }
  0x1f   : > { %v797_v17 = vld [vmem:[%s1947_s15] sm:$0x7] }
  0x20   : > { %v914_v22 = vld [vmem:[%s1947_s15] sm:$0x7] }
  0x21   : > { %v1031_v35 = vld [vmem:[%s1947_s15] sm:$0x7] }
  0x22   : > { %v1148_v61 = vld [vmem:[%s1947_s15] sm:$0x7]  ;;  %s1850_s15 = smov 90  }
  0x23   : > { %v278_v2 = vld [vmem:[#allocation1 + $0x12] sm:$0xff]  ;;  %v274_v3 = vld [vmem:[#allocation1] sm:$0xff]  ;;  %v276_v4 = vld [vmem:[#allocation1 + $0x9] sm:$0xff] }
  0x24   : > { %284 = vrot.lane.b32.xlu1 %v278_v2, %s1843_s16  ;;  %280 = vrot.lane.b32.xlu0 %v274_v3, %s1843_s16  ;;  %373 = vst [vmem:[#allocation1] ss:$9 sm:$0xff] %v252_v1  ;;  %v1700_v2 = vld [vmem:[%s2267_s2 + $0x30] sm:$0xff] }
  0x2b   : > { %v374_v6 = vld [vmem:[#allocation1] sm:$0xff]  ;;  %v1951_v7 = vld [vmem:[#allocation1 + $0x9] sm:$0xff]  ;;  %v1953_v8 = vld [vmem:[#allocation1 + $0x12] sm:$0xff] }
  0x2c   : > { %282 = vrot.lane.b32.xlu0 %v276_v4, %s1843_s16  ;;  %463 = vst [vmem:[#allocation1] ss:$9 sm:$0xff] %v446_v5  ;;  %v383_v24 = vsel %vm296_vm0, %v374_v6, 0  ;;  %v385_v44 = vsel %vm296_vm0, %v1951_v7, 0  ;;  %v387_v45 = vsel %vm296_vm0, %v1953_v8, 0  ;;  %v1701_v8 = vld [vmem:[%s2267_s2 + $0x38] sm:$0xff] }
  0x2d   : > { %396 = vmatpush.bf16.msra.mxu3 %v383_v24 }
  0x30   : > { %1554 = vmatmul.msk.bf16.vlgmr.msra.gmra.mxu3 %vm289_vm1, %v1963_v26 }
  0x33   : > { %v464_v10 = vld [vmem:[#allocation1] sm:$0xff]  ;;  %v466_v11 = vld [vmem:[#allocation1 + $0x9] sm:$0xff]  ;;  %v468_v12 = vld [vmem:[#allocation1 + $0x12] sm:$0xff] }
  0x34   : > { %470 = vrot.lane.b32.xlu1 %v464_v10, %s1844_s17  ;;  %472 = vrot.lane.b32.xlu2 %v466_v11, %s1844_s17  ;;  %580 = vst [vmem:[#allocation1] ss:$9 sm:$0xff] %v563_v9 }
  0x3b   : > { %v583_v14 = vld [vmem:[#allocation1 + $0x9] sm:$0xff]  ;;  %v581_v15 = vld [vmem:[#allocation1] sm:$0xff]  ;;  %v585_v16 = vld [vmem:[#allocation1 + $0x12] sm:$0xff] }
  0x3c   : > { %474 = vrot.lane.b32.xlu2 %v468_v12, %s1844_s17  ;;  %589 = vrot.lane.b32.xlu1 %v583_v14, %s1845_s18  ;;  %697 = vst [vmem:[#allocation1] ss:$9 sm:$0xff] %v680_v13  ;;  %s1799_s17 = scalar_lea.hbm %s2271_s6, 6 }
  0x3d   : > { %587 = vrot.lane.b32.xlu0 %v581_v15, %s1845_s18 }
  0x40   : > { %1555 = vmatmul.msk.bf16.gmra.mxu3 %vm289_vm1, %v1970_v29 }
  0x43   : > { %v698_v18 = vld [vmem:[#allocation1] sm:$0xff]  ;;  %v702_v19 = vld [vmem:[#allocation1 + $0x12] sm:$0xff]  ;;  %v700_v20 = vld [vmem:[#allocation1 + $0x9] sm:$0xff] }
  0x44   : > { %591 = vrot.lane.b32.xlu2 %v585_v16, %s1845_s18  ;;  %706 = vrot.lane.b32.xlu1 %v700_v20, %s1846_s19  ;;  %814 = vst [vmem:[#allocation1] ss:$9 sm:$0xff] %v797_v17  ;;  %v2057_v20 = vld [vmem:[%s2267_s2 + $0x58] sm:$0xff] }
  0x45   : > { %704 = vrot.lane.b32.xlu0 %v698_v18, %s1846_s19 }
  0x4b   : > { %v817_v21 = vld [vmem:[#allocation1 + $0x9] sm:$0xff]  ;;  %v819_v23 = vld [vmem:[#allocation1 + $0x12] sm:$0xff]  ;;  %v815_v25 = vld [vmem:[#allocation1] sm:$0xff] }
  0x4c   : > { %708 = vrot.lane.b32.xlu2 %v702_v19, %s1846_s19  ;;  %825 = vrot.lane.b32.xlu1 %v819_v23, %s1847_s20  ;;  %931 = vst [vmem:[#allocation1] ss:$9 sm:$0xff] %v914_v22  ;;  %v2046_v19 = vld [vmem:[%s2267_s2 + $0x50] sm:$0xff] }
  0x4d   : > { %823 = vrot.lane.b32.xlu0 %v817_v21, %s1847_s20 }
  0x53   : > { %v934_v27 = vld [vmem:[#allocation1 + $0x9] sm:$0xff]  ;;  %v932_v28 = vld [vmem:[#allocation1] sm:$0xff]  ;;  %v936_v37 = vld [vmem:[#allocation1 + $0x12] sm:$0xff] }
  0x54   : > { %821 = vrot.lane.b32.xlu2 %v815_v25, %s1847_s20  ;;  %940 = vrot.lane.b32.xlu1 %v934_v27, %s1848_s23  ;;  %1048 = vst [vmem:[#allocation1] ss:$9 sm:$0xff] %v1031_v35  ;;  %s251_s20 = sld [smem:[#allocation2]] }
  0x55   : > { %938 = vrot.lane.b32.xlu0 %v932_v28, %s1848_s23 }
  0x5b   : > { %v1051_v49 = vld [vmem:[#allocation1 + $0x9] sm:$0xff]  ;;  %v1049_v54 = vld [vmem:[#allocation1] sm:$0xff]  ;;  %v1053_v62 = vld [vmem:[#allocation1 + $0x12] sm:$0xff] }
  0x5c   : > { %942 = vrot.lane.b32.xlu2 %v936_v37, %s1848_s23  ;;  %1057 = vrot.lane.b32.xlu1 %v1051_v49, %s1849_s13  ;;  %1165 = vst [vmem:[#allocation1] ss:$9 sm:$0xff] %v1148_v61 }
  0x5d   : > { %1055 = vrot.lane.b32.xlu0 %v1049_v54, %s1849_s13 }
  0x63   : > { %v1168_v3 = vld [vmem:[#allocation1 + $0x9] sm:$0xff]  ;;  %v1166_v4 = vld [vmem:[#allocation1] sm:$0xff]  ;;  %v1170_v18 = vld [vmem:[#allocation1 + $0x12] sm:$0xff] }
  0x64   : > { %1059 = vrot.lane.b32.xlu2 %v1053_v62, %s1849_s13  ;;  %1174 = vrot.lane.b32.xlu1 %v1168_v3, %s1850_s15  ;;  %s1795_s13 = scalar_lea.hbm %s1794_s12, 3 }
  0x65   : > { %1172 = vrot.lane.b32.xlu0 %v1166_v4, %s1850_s15  ;;  %p1796_p11 = scmp.ne.s32.totalorder %s1794_s12, %s1795_s13  ;;  %p1801_p1 = scmp.lt.s32.totalorder %s1799_s17, %s1795_s13 }
  0x67   : > { %p1797_p12 = pnand %p1796_p11, %p1932_p5  ;;  %p1802_p2 = por %p1801_p1, %p1800_p0 }
  0x69   : > { %p1798_p13 = pneg %p1797_p12 }
  0x6b   : > { %p1803_p3 = pnand %p1802_p2, %p1798_p13 }
  0x6c   : > { %1176 = vrot.lane.b32.xlu2 %v1170_v18, %s1850_s15  ;;  %s243_s15 = sand.u32 1, %s1833_s26  }
  0x6d   : > { %s1712_s21 = smul.u32 3, %s243_s15  ;;  %s1450_s11 = scalar_lea.sflag [#allocation5], %s243_s15 }
  0x6f   : > { %s245_s5 = scalar_lea.vmem [#allocation4], %s1712_s21 }
  0x70   : > { %s1462_s30 = sshll.u32 %s245_s5, 4  ;;  %s1463_s30 = int_to_ptr.vmem [resolvable:$true] %s1462_s30 }
  0x8e   : > { %v473_v30 = vpop.permute.xlu2 %472 }
  0x96   : > { %v285_v31 = vpop.permute.xlu1 %284  ;;  %v281_v32 = vpop.permute.xlu0 %280 }
  0x97   : > { %v304_v33 = vsel %vm296_vm0, %v285_v31, 0  ;;  %v475_v36 = vpop.permute.xlu2 %474 }
  0x98   : > { %351 = vmatpush.bf16.msra.mxu2 %v304_v33  ;;  %v478_v38 = vsel %vm476_vm2, %v473_v30, %v475_v36  ;;  %v492_v48 = vsel %vm296_vm0, %v475_v36, 0  ;;  %v2076_v33 = vld [vmem:[%s2267_s2 + $0x60] sm:$0xff]  ;;  %v1703_v36 = vld [vmem:[%s2267_s2 + $0x48] sm:$0xff] }
  0x99   : > { %v489_v39 = vsel %vm296_vm0, %v478_v38, 0  ;;  %v2092_v38 = vld [vmem:[%s2267_s2 + $0x68] sm:$0xff] }
  0x9a   : > { %520 = vmatpush.bf16.msrb.mxu3 %v489_v39 }
  0x9b   : > { %1544 = vmatmul.msk.bf16.vlgmr.msra.gmra.mxu2 %vm289_vm1, %v1696_v34 }
  0x9d   : > { %1574 = vmatmul.msk.bf16.vlgmr.msrb.gmra.mxu3 %vm289_vm1, %v1985_v41 }
  0x9e   : > { %v283_v40 = vpop.permute.xlu0 %282 }
  0x9f   : > { %v287_v42 = vsel %vm286_vm3, %v281_v32, %v283_v40  ;;  %v288_v43 = vsel %vm286_vm3, %v283_v40, %v285_v31  ;;  %v592_v56 = vpop.permute.xlu2 %591 }
  0xa0   : > { %v298_v46 = vsel %vm296_vm0, %v287_v42, 0  ;;  %v301_v47 = vsel %vm296_vm0, %v288_v43, 0  ;;  %v609_v58 = vsel %vm296_vm0, %v592_v56, 0 }
  0xa1   : > { %313 = vmatpush.bf16.msra.mxu0 %v298_v46  ;;  %332 = vmatpush.bf16.msra.mxu1 %v301_v47  ;;  %v1708_v46 = vld [vmem:[%s2267_s2 + $0x70] sm:$0xff] }
  0xa2   : > { %656 = vmatpush.bf16.msra.mxu3 %v609_v58 }
  0xa4   : > { %1540 = vmatmul.msk.bf16.vlgmr.msra.gmra.mxu0 %vm289_vm1, %v1696_v34  ;;  %1542 = vmatmul.msk.bf16.vlgmr.msra.gmra.mxu1 %vm289_vm1, %v1696_v34 }
  0xa5   : > { %415 = vmatpush.bf16.msrb.mxu0 %v385_v44  ;;  %434 = vmatpush.bf16.msrb.mxu1 %v387_v45 }
  0xa6   : > { %v471_v50 = vpop.permute.xlu1 %470 }
  0xa7   : > { %v477_v52 = vsel %vm476_vm2, %v471_v50, %v473_v30  ;;  %v709_v5 = vpop.permute.xlu2 %708 }
  0xa8   : > { %v486_v53 = vsel %vm296_vm0, %v477_v52, 0  ;;  %v726_v7 = vsel %vm296_vm0, %v709_v5, 0 }
  0xa9   : > { %539 = vmatpush.bf16.msra.mxu0 %v492_v48  ;;  %501 = vmatpush.bf16.msrb.mxu2 %v486_v53 }
  0xab   : > { %1545 = vmatmul.msk.bf16.gmra.mxu2 %vm289_vm1, %v1697_v51 }
  0xad   : > { %1575 = vmatmul.msk.bf16.gmra.mxu3 %vm289_vm1, %v2007_v55 }
  0xae   : > { %v590_v57 = vpop.permute.xlu1 %589 }
  0xaf   : > { %v595_v59 = vsel %vm593_vm4, %v590_v57, %v592_v56  ;;  %v588_v63 = vpop.permute.xlu0 %587  ;;  %v822_v15 = vpop.permute.xlu2 %821 }
  0xb0   : > { %v606_v60 = vsel %vm296_vm0, %v595_v59, 0  ;;  %v594_v0 = vsel %vm593_vm4, %v588_v63, %v590_v57  ;;  %v1709_v59 = vld [vmem:[%s2267_s2 + $0x78] sm:$0xff] }
  0xb1   : > { %637 = vmatpush.bf16.msra.mxu2 %v606_v60  ;;  %v603_v1 = vsel %vm296_vm0, %v594_v0, 0 }
  0xb2   : > { %618 = vmatpush.bf16.msra.mxu1 %v603_v1 }
  0xb3   : > { %v398_v35 = vpop.f32.mrf.mxu3 }
  0xb4   : > { %1541 = vmatmul.msk.bf16.gmra.mxu0 %vm289_vm1, %v1697_v51  ;;  %1543 = vmatmul.msk.bf16.gmra.mxu1 %vm289_vm1, %v1697_v51 }
  0xb6   : > { %v707_v9 = vpop.permute.xlu1 %706 }
  0xb7   : > { %v705_v6 = vpop.permute.xlu0 %704  ;;  %v712_v12 = vsel %vm710_vm5, %v707_v9, %v709_v5  ;;  %v943_v28 = vpop.permute.xlu2 %942 }
  0xb8   : > { %v711_v11 = vsel %vm710_vm5, %v705_v6, %v707_v9  ;;  %v723_v14 = vsel %vm296_vm0, %v712_v12, 0  ;;  %v960_v34 = vsel %vm296_vm0, %v943_v28, 0 }
  0xb9   : > { %v720_v13 = vsel %vm296_vm0, %v711_v11, 0 }
  0xbb   : > { %1572 = vmatmul.msk.bf16.vlgmr.msrb.gmra.mxu2 %vm289_vm1, %v1985_v41  ;;  %v2087_v37 = vpop.f32.mrf.mxu3 }
  0xbc   : > { %773 = vmatpush.bf16.msrb.mxu2 %v726_v7 }
  0xbd   : > { %1594 = vmatmul.msk.bf16.vlgmr.msra.gmra.mxu3 %vm289_vm1, %v1700_v2 }
  0xbe   : > { %v826_v21 = vpop.permute.xlu1 %825 }
  0xbf   : > { %v824_v10 = vpop.permute.xlu0 %823  ;;  %v843_v23 = vsel %vm296_vm0, %v826_v21, 0  ;;  %v1060_v39 = vpop.permute.xlu2 %1059 }
  0xc0   : > { %v828_v16 = vsel %vm827_vm6, %v822_v15, %v824_v10  ;;  %v829_v22 = vsel %vm827_vm6, %v824_v10, %v826_v21  ;;  %v1077_v42 = vsel %vm296_vm0, %v1060_v39, 0 }
  0xc1   : > { %v837_v17 = vsel %vm296_vm0, %v828_v16, 0  ;;  %v840_v24 = vsel %vm296_vm0, %v829_v22, 0 }
  0xc2   : > { %852 = vmatpush.bf16.msrb.mxu3 %v837_v17 }
  0xc4   : > { %1556 = vmatmul.msk.bf16.vlgmr.msrb.gmra.mxu0 %vm289_vm1, %v1963_v26  ;;  %1558 = vmatmul.msk.bf16.vlgmr.msrb.gmra.mxu1 %vm289_vm1, %v1963_v26 }
  0xc5   : > { %735 = vmatpush.bf16.msrb.mxu0 %v720_v13  ;;  %754 = vmatpush.bf16.msrb.mxu1 %v723_v14 }
  0xc6   : > { %v941_v25 = vpop.permute.xlu1 %940 }
  0xc7   : > { %v939_v26 = vpop.permute.xlu0 %938  ;;  %v946_v31 = vsel %vm944_vm7, %v941_v25, %v943_v28  ;;  %v1177_v1 = vpop.permute.xlu2 %1176  ;;  %v1851_v28 = vmov 0  }
  0xc8   : > { %v945_v27 = vsel %vm944_vm7, %v939_v26, %v941_v25  ;;  %v957_v32 = vsel %vm296_vm0, %v946_v31, 0  ;;  %1765 = vset.pattern.permute.xlu1 %v1851_v28  ;;  %1764 = vset.pattern.permute.xlu0 %v1851_v28 }
  0xc9   : > { %v954_v30 = vsel %vm296_vm0, %v945_v27, 0  ;;  %988 = vmatpush.bf16.msra.mxu3 %v957_v32  ;;  %1766 = vset.pattern.permute.xlu2 %v1851_v28 }
  0xcb   : > { %1573 = vmatmul.msk.bf16.gmra.mxu2 %vm289_vm1, %v2007_v55 }
  0xcd   : > { %1595 = vmatmul.msk.bf16.gmra.mxu3 %vm289_vm1, %v1701_v8 }
  0xce   : > { %v1058_v40 = vpop.permute.xlu1 %1057 }
  0xcf   : > { %v1063_v43 = vsel %vm1061_vm8, %v1058_v40, %v1060_v39  ;;  %v1056_v47 = vpop.permute.xlu0 %1055 }
  0xd0   : > { %v1074_v44 = vsel %vm296_vm0, %v1063_v43, 0  ;;  %v1062_v48 = vsel %vm1061_vm8, %v1056_v47, %v1058_v40  ;;  %v1266_v40 = vld [vmem:[%s2268_s3 + $0x8] sm:$0xff]  ;;  %v1710_v43 = vld [vmem:[%s2267_s2 + $0x80] sm:$0xff] }
  0xd1   : > { %v1071_v50 = vsel %vm296_vm0, %v1062_v48, 0 }
  0xd4   : > { %1557 = vmatmul.msk.bf16.gmra.mxu0 %vm289_vm1, %v1970_v29  ;;  %1559 = vmatmul.msk.bf16.gmra.mxu1 %vm289_vm1, %v1970_v29  ;;  %v1702_v29 = vld [vmem:[%s2267_s2 + $0x40] sm:$0xff] }
  0xd6   : > { %v1175_v5 = vpop.permute.xlu1 %1174 }
  0xd7   : > { %v1173_v6 = vpop.permute.xlu0 %1172  ;;  %v1180_v7 = vsel %vm1178_vm9, %v1175_v5, %v1177_v1 }
  0xd8   : > { %v1191_v10 = vsel %vm296_vm0, %v1180_v7, 0 }
  0xdb   : > { %1592 = vmatmul.msk.bf16.vlgmr.msra.gmra.mxu2 %vm289_vm1, %v1700_v2 }
  0xdc   : > { %969 = vmatpush.bf16.msra.mxu2 %v954_v30 }
  0xdd   : > { %1626 = vmatmul.msk.bf16.vlgmr.msrb.gmra.mxu3 %vm289_vm1, %v2046_v19 }
  0xde   : > { %1124 = vmatpush.bf16.msrb.mxu3 %v1077_v42 }
  0xe4   : > { %1576 = vmatmul.msk.bf16.vlgmr.msra.gmra.mxu0 %vm289_vm1, %v1985_v41  ;;  %1590 = vmatmul.msk.bf16.vlgmr.msra.gmra.mxu1 %vm289_vm1, %v1700_v2  ;;  %v403_v41 = vpop.f32.mrf.mxu3  ;;  %v1194_v2 = vsel %vm296_vm0, %v1177_v1, 0 }
  0xe5   : > { %890 = vmatpush.bf16.msra.mxu1 %v843_v23  ;;  %871 = vmatpush.bf16.msra.mxu0 %v840_v24 }
  0xeb   : > { %1593 = vmatmul.msk.bf16.gmra.mxu2 %vm289_vm1, %v1701_v8 }
  0xec   : > { %v2105_v49 = vpop.f32.mrf.mxu3 }
  0xed   : > { %1627 = vmatmul.msk.bf16.gmra.mxu3 %vm289_vm1, %v2057_v20 }
  0xf4   : > { %1577 = vmatmul.msk.bf16.gmra.mxu0 %vm289_vm1, %v2007_v55  ;;  %1591 = vmatmul.msk.bf16.gmra.mxu1 %vm289_vm1, %v1701_v8  ;;  %v1179_v8 = vsel %vm1178_vm9, %v1173_v6, %v1175_v5 }
  0xf5   : > { %v1188_v11 = vsel %vm296_vm0, %v1179_v8, 0 }
  0xfb   : > { %1612 = vmatmul.msk.bf16.vlgmr.msrb.gmra.mxu2 %vm289_vm1, %v1702_v29 }
  0xfc   : > { %1105 = vmatpush.bf16.msrb.mxu2 %v1074_v44 }
  0xfd   : > { %1646 = vmatmul.msk.bf16.vlgmr.msra.gmra.mxu3 %vm289_vm1, %v2076_v33 }
 0x104   : > { %1608 = vmatmul.msk.bf16.vlgmr.msrb.gmra.mxu0 %vm289_vm1, %v1702_v29  ;;  %1610 = vmatmul.msk.bf16.vlgmr.msrb.gmra.mxu1 %vm289_vm1, %v1702_v29  ;;  %v1268_v29 = vld [vmem:[%s2268_s3 + $0x18] sm:$0xff] }
 0x105   : > { %1007 = vmatpush.bf16.msrb.mxu0 %v960_v34  ;;  %1086 = vmatpush.bf16.msrb.mxu1 %v1071_v50 }
 0x106   : > { %1286 = vperm.xlu1 %1765, %v1268_v29  }
 0x10b   : > { %1613 = vmatmul.msk.bf16.gmra.mxu2 %vm289_vm1, %v1703_v36 }
 0x10d   : > { %1647 = vmatmul.msk.bf16.gmra.mxu3 %vm289_vm1, %v2092_v38 }
 0x10e   : > { %1276 = vperm.xlu1 %1765, %v1266_v40  }
 0x114   : > { %1609 = vmatmul.msk.bf16.gmra.mxu0 %vm289_vm1, %v1703_v36  ;;  %1611 = vmatmul.msk.bf16.gmra.mxu1 %vm289_vm1, %v1703_v36 }
 0x11b   : > { %1644 = vmatmul.msk.bf16.vlgmr.msra.gmra.mxu2 %vm289_vm1, %v2076_v33 }
 0x11c   : > { %1241 = vmatpush.bf16.msra.mxu2 %v1194_v2 }
 0x11d   : > { %1666 = vmatmul.msk.bf16.vlgmr.msrb.gmra.mxu3 %vm289_vm1, %v1708_v46 }
 0x11e   : > { %v353_v45 = vpop.f32.mrf.mxu2 }
 0x120   : > { %v522_v55 = vpop.f32.mrf.mxu3 }
 0x121   : > { %v315_v51 = vpop.f32.mrf.mxu0  ;;  %v334_v52 = vpop.f32.mrf.mxu1 }
 0x122   : > { %v399_v53 = vadd.f32 %v398_v35, %v315_v51 }
 0x124   : > { %1628 = vmatmul.msk.bf16.vlgmr.msra.gmra.mxu0 %vm289_vm1, %v2046_v19  ;;  %1630 = vmatmul.msk.bf16.vlgmr.msra.gmra.mxu1 %vm289_vm1, %v2046_v19 }
 0x125   : > { %1203 = vmatpush.bf16.msra.mxu0 %v1188_v11  ;;  %1222 = vmatpush.bf16.msra.mxu1 %v1191_v10 }
 0x126   : > { %v355_v54 = vpop.f32.mrf.mxu2 }
 0x128   : > { %v524_v63 = vpop.f32.mrf.mxu3 }
 0x129   : > { %v317_v56 = vpop.f32.mrf.mxu0  ;;  %v336_v57 = vpop.f32.mrf.mxu1 }
 0x12a   : > { %v401_v19 = vadd.f32 %v2087_v37, %v317_v56 }
 0x12b   : > { %1645 = vmatmul.msk.bf16.gmra.mxu2 %vm289_vm1, %v2092_v38 }
 0x12d   : > { %1667 = vmatmul.msk.bf16.gmra.mxu3 %vm289_vm1, %v1709_v59 }
 0x12e   : > { %v358_v58 = vpop.f32.mrf.mxu2 }
 0x130   : > { %v527_v9 = vpop.f32.mrf.mxu3 }
 0x131   : > { %v320_v60 = vpop.f32.mrf.mxu0  ;;  %v339_v61 = vpop.f32.mrf.mxu1 }
 0x132   : > { %v404_v62 = vadd.f32 %v403_v41, %v320_v60 }
 0x134   : > { %1629 = vmatmul.msk.bf16.gmra.mxu0 %vm289_vm1, %v2057_v20  ;;  %1631 = vmatmul.msk.bf16.gmra.mxu1 %vm289_vm1, %v2057_v20 }
 0x136   : > { %v360_v0 = vpop.f32.mrf.mxu2 }
 0x138   : > { %v529_v21 = vpop.f32.mrf.mxu3 }
 0x139   : > { %v322_v3 = vpop.f32.mrf.mxu0  ;;  %v341_v4 = vpop.f32.mrf.mxu1 }
 0x13a   : > { %v406_v39 = vadd.f32 %v2105_v49, %v322_v3  ;;  %v1267_v49 = vld [vmem:[%s2268_s3 + $0x10] sm:$0xff] }
 0x13b   : > { %1664 = vmatmul.msk.bf16.vlgmr.msrb.gmra.mxu2 %vm289_vm1, %v1708_v46  ;;  %1281 = vperm.xlu0 %1764, %v1267_v49  }
 0x13e   : > { %v503_v12 = vpop.f32.mrf.mxu2 }
 0x13f   : > { %v551_v13 = vadd.f32 %v503_v12, %v399_v53 }
 0x140   : > { %v658_v32 = vpop.f32.mrf.mxu3 }
 0x141   : > { %v417_v14 = vpop.f32.mrf.mxu0  ;;  %v436_v15 = vpop.f32.mrf.mxu1 }
 0x142   : > { %v418_v16 = vadd.f32 %v417_v14, %v334_v52  ;;  %v437_v17 = vadd.f32 %v436_v15, %v353_v45 }
 0x144   : > { %v552_v18 = vadd.f32 %v522_v55, %v418_v16  ;;  %1648 = vmatmul.msk.bf16.vlgmr.msrb.gmra.mxu0 %vm289_vm1, %v2076_v33  ;;  %1662 = vmatmul.msk.bf16.vlgmr.msrb.gmra.mxu1 %vm289_vm1, %v1708_v46 }
 0x146   : > { %v505_v20 = vpop.f32.mrf.mxu2 }
 0x147   : > { %v554_v22 = vadd.f32 %v505_v20, %v401_v19 }
 0x149   : > { %v419_v23 = vpop.f32.mrf.mxu0  ;;  %v438_v24 = vpop.f32.mrf.mxu1 }
 0x14a   : > { %v420_v25 = vadd.f32 %v419_v23, %v336_v57  ;;  %v439_v26 = vadd.f32 %v438_v24, %v355_v54 }
 0x14b   : > { %1665 = vmatmul.msk.bf16.gmra.mxu2 %vm289_vm1, %v1709_v59 }
 0x14c   : > { %v555_v27 = vadd.f32 %v524_v63, %v420_v25 }
 0x14e   : > { %v508_v30 = vpop.f32.mrf.mxu2 }
 0x14f   : > { %v557_v31 = vadd.f32 %v508_v30, %v404_v62 }
 0x151   : > { %v422_v33 = vpop.f32.mrf.mxu0  ;;  %v441_v34 = vpop.f32.mrf.mxu1 }
 0x152   : > { %v423_v35 = vadd.f32 %v422_v33, %v339_v61  ;;  %v442_v36 = vadd.f32 %v441_v34, %v358_v58  ;;  %v1265_v58 = vld [vmem:[%s2268_s3] sm:$0xff]  ;;  %v1711_v61 = vld [vmem:[%s2267_s2 + $0x88] sm:$0xff] }
 0x153   : > { %1271 = vperm.xlu2 %1766, %v1265_v58  }
 0x154   : > { %v558_v37 = vadd.f32 %v527_v9, %v423_v35  ;;  %1649 = vmatmul.msk.bf16.gmra.mxu0 %vm289_vm1, %v2092_v38  ;;  %1663 = vmatmul.msk.bf16.gmra.mxu1 %vm289_vm1, %v1709_v59  ;;  %v660_v38 = vpop.f32.mrf.mxu3 }
 0x156   : > { %v510_v41 = vpop.f32.mrf.mxu2 }
 0x157   : > { %v560_v42 = vadd.f32 %v510_v41, %v406_v39 }
 0x159   : > { %v424_v44 = vpop.f32.mrf.mxu0  ;;  %v443_v45 = vpop.f32.mrf.mxu1 }
 0x15a   : > { %v425_v46 = vadd.f32 %v424_v44, %v341_v4  ;;  %v444_v47 = vadd.f32 %v443_v45, %v360_v0 }
 0x15b   : > { %1684 = vmatmul.msk.bf16.vlgmr.msra.gmra.mxu2 %vm289_vm1, %v1710_v43 }
 0x15c   : > { %v561_v48 = vadd.f32 %v529_v21, %v425_v46  ;;  %v663_v57 = vpop.f32.mrf.mxu3 }
 0x15e   : > { %v639_v50 = vpop.f32.mrf.mxu2 }
 0x15f   : > { %v669_v51 = vadd.f32 %v639_v50, %v552_v18 }
 0x161   : > { %v541_v52 = vpop.f32.mrf.mxu0  ;;  %v620_v53 = vpop.f32.mrf.mxu1 }
 0x162   : > { %v553_v54 = vadd.f32 %v541_v52, %v437_v17  ;;  %v668_v55 = vadd.f32 %v620_v53, %v551_v13 }
 0x164   : > { %v670_v56 = vadd.f32 %v658_v32, %v553_v54  ;;  %1680 = vmatmul.msk.bf16.vlgmr.msra.gmra.mxu0 %vm289_vm1, %v1710_v43  ;;  %1682 = vmatmul.msk.bf16.vlgmr.msra.gmra.mxu1 %vm289_vm1, %v1710_v43  ;;  %v665_v4 = vpop.f32.mrf.mxu3 }
 0x166   : > { %v641_v59 = vpop.f32.mrf.mxu2 }
 0x167   : > { %v672_v60 = vadd.f32 %v641_v59, %v555_v27  ;;  %v1320_v27 = vld [vmem:[#allocation3] sm:$0x1] }
 0x168   : > { %1323 = vperm.xlu2 %1766, %v1320_v27  }
 0x169   : > { %v543_v62 = vpop.f32.mrf.mxu0  ;;  %v622_v63 = vpop.f32.mrf.mxu1 }
 0x16a   : > { %v556_v0 = vadd.f32 %v543_v62, %v439_v26  ;;  %v671_v1 = vadd.f32 %v622_v63, %v554_v22 }
 0x16b   : > { %1685 = vmatmul.msk.bf16.gmra.mxu2 %vm289_vm1, %v1711_v61 }
 0x16c   : > { %v673_v2 = vadd.f32 %v660_v38, %v556_v0  ;;  %v854_v13 = vpop.f32.mrf.mxu3 }
 0x16e   : > { %v644_v3 = vpop.f32.mrf.mxu2 }
 0x16f   : > { %v675_v5 = vadd.f32 %v644_v3, %v558_v37 }
 0x171   : > { %v546_v6 = vpop.f32.mrf.mxu0  ;;  %v625_v7 = vpop.f32.mrf.mxu1 }
 0x172   : > { %v559_v8 = vadd.f32 %v546_v6, %v442_v36  ;;  %v674_v9 = vadd.f32 %v625_v7, %v557_v31 }
 0x174   : > { %v676_v10 = vadd.f32 %v663_v57, %v559_v8  ;;  %1681 = vmatmul.msk.bf16.gmra.mxu0 %vm289_vm1, %v1711_v61  ;;  %1683 = vmatmul.msk.bf16.gmra.mxu1 %vm289_vm1, %v1711_v61  ;;  %v856_v25 = vpop.f32.mrf.mxu3 }
 0x176   : > { %v646_v11 = vpop.f32.mrf.mxu2 }
 0x177   : > { %v678_v12 = vadd.f32 %v646_v11, %v561_v48 }
 0x179   : > { %v548_v14 = vpop.f32.mrf.mxu0  ;;  %v627_v15 = vpop.f32.mrf.mxu1 }
 0x17a   : > { %v562_v16 = vadd.f32 %v548_v14, %v444_v47  ;;  %v677_v17 = vadd.f32 %v627_v15, %v560_v42 }
 0x17c   : > { %v679_v18 = vadd.f32 %v665_v4, %v562_v16  ;;  %v859_v35 = vpop.f32.mrf.mxu3 }
 0x17e   : > { %v775_v19 = vpop.f32.mrf.mxu2 }
 0x17f   : > { %v787_v20 = vadd.f32 %v775_v19, %v670_v56 }
 0x181   : > { %v737_v21 = vpop.f32.mrf.mxu0  ;;  %v756_v22 = vpop.f32.mrf.mxu1 }
 0x182   : > { %v785_v23 = vadd.f32 %v737_v21, %v668_v55  ;;  %v786_v24 = vadd.f32 %v756_v22, %v669_v51 }
 0x184   : > { %v902_v26 = vadd.f32 %v854_v13, %v785_v23  ;;  %v2162_v45 = vpop.f32.mrf.mxu3 }
 0x186   : > { %v777_v28 = vpop.f32.mrf.mxu2 }
 0x187   : > { %v790_v29 = vadd.f32 %v777_v28, %v673_v2 }
 0x189   : > { %v739_v30 = vpop.f32.mrf.mxu0  ;;  %v758_v31 = vpop.f32.mrf.mxu1 }
 0x18a   : > { %v788_v32 = vadd.f32 %v739_v30, %v671_v1  ;;  %v789_v33 = vadd.f32 %v758_v31, %v672_v60 }
 0x18c   : > { %v905_v34 = vadd.f32 %v856_v25, %v788_v32  ;;  %v990_v52 = vpop.f32.mrf.mxu3  ;;  %v2184_v25 = vpop.permute.xlu1 %1286 }
 0x18e   : > { %v780_v36 = vpop.f32.mrf.mxu2 }
 0x18f   : > { %v2160_v37 = vadd.f32 %v780_v36, %v676_v10 }
 0x191   : > { %v742_v39 = vpop.f32.mrf.mxu0  ;;  %v761_v40 = vpop.f32.mrf.mxu1 }
 0x192   : > { %v791_v41 = vadd.f32 %v742_v39, %v674_v9  ;;  %v792_v42 = vadd.f32 %v761_v40, %v675_v5 }
 0x194   : > { %v908_v43 = vadd.f32 %v859_v35, %v791_v41  ;;  %v992_v5 = vpop.f32.mrf.mxu3 }
 0x196   : > { %v782_v44 = vpop.f32.mrf.mxu2 }
 0x197   : > { %v2164_v46 = vadd.f32 %v782_v44, %v679_v18 }
 0x199   : > { %v744_v47 = vpop.f32.mrf.mxu0  ;;  %v763_v38 = vpop.f32.mrf.mxu1 }
 0x19a   : > { %v2166_v48 = vadd.f32 %v744_v47, %v677_v17  ;;  %v2168_v49 = vadd.f32 %v763_v38, %v678_v12 }
 0x19c   : > { %v995_v11 = vpop.f32.mrf.mxu3 }
 0x19e   : > { %v971_v50 = vpop.f32.mrf.mxu2 }
 0x19f   : > { %v1019_v51 = vadd.f32 %v971_v50, %v902_v26 }
 0x1a1   : > { %v873_v53 = vpop.f32.mrf.mxu0  ;;  %v892_v54 = vpop.f32.mrf.mxu1 }
 0x1a2   : > { %v903_v55 = vadd.f32 %v873_v53, %v786_v24  ;;  %v904_v56 = vadd.f32 %v892_v54, %v787_v20 }
 0x1a4   : > { %v1020_v57 = vadd.f32 %v990_v52, %v903_v55  ;;  %v2178_v17 = vpop.f32.mrf.mxu3 }
 0x1a6   : > { %v973_v58 = vpop.f32.mrf.mxu2 }
 0x1a7   : > { %v1022_v59 = vadd.f32 %v973_v58, %v905_v34 }
 0x1a9   : > { %v875_v60 = vpop.f32.mrf.mxu0  ;;  %v894_v61 = vpop.f32.mrf.mxu1 }
 0x1aa   : > { %v906_v62 = vadd.f32 %v875_v60, %v789_v33  ;;  %v907_v63 = vadd.f32 %v894_v61, %v790_v29 }
 0x1ac   : > { %v1126_v21 = vpop.f32.mrf.mxu3  ;;  %v1023_v39 = vadd.f32 %v992_v5, %v906_v62 }
 0x1ad   : > { %v1272_v35 = vpop.permute.xlu2 %1271 }
 0x1ae   : > { %v976_v0 = vpop.f32.mrf.mxu2 }
 0x1af   : > { %v2170_v1 = vadd.f32 %v976_v0, %v908_v43  ;;  %v1277_v43 = vpop.permute.xlu1 %1276 }
 0x1b1   : > { %v878_v2 = vpop.f32.mrf.mxu0  ;;  %v897_v3 = vpop.f32.mrf.mxu1 }
 0x1b2   : > { %v2172_v4 = vadd.f32 %v878_v2, %v792_v42 }
 0x1b4   : > { %v1128_v27 = vpop.f32.mrf.mxu3 }
 0x1b6   : > { %v2174_v6 = vpop.f32.mrf.mxu2 }
 0x1b9   : > { %v2176_v7 = vpop.f32.mrf.mxu0  ;;  %v899_v8 = vpop.f32.mrf.mxu1 }
 0x1bc   : > { %v1131_v52 = vpop.f32.mrf.mxu3 }
 0x1be   : > { %v1107_v9 = vpop.f32.mrf.mxu2 }
 0x1bf   : > { %v1137_v10 = vadd.f32 %v1107_v9, %v1020_v57 }
 0x1c1   : > { %v1009_v12 = vpop.f32.mrf.mxu0  ;;  %v1088_v13 = vpop.f32.mrf.mxu1 }
 0x1c2   : > { %v1021_v26 = vadd.f32 %v1009_v12, %v904_v56  ;;  %v1136_v34 = vadd.f32 %v1088_v13, %v1019_v51  ;;  %v910_v51 = vadd.f32 %v897_v3, %v2160_v37  ;;  %v1026_v37 = vadd.f32 %v995_v11, %v2172_v4 }
 0x1c3   : > { %v912_v3 = vadd.f32 %v2176_v7, %v2168_v49 }
 0x1c4   : > { %v1138_v29 = vadd.f32 %v1126_v21, %v1021_v26 }
 0x1c6   : > { %v1109_v14 = vpop.f32.mrf.mxu2 }
 0x1c7   : > { %v1140_v38 = vadd.f32 %v1109_v14, %v1023_v39  ;;  %v913_v14 = vadd.f32 %v899_v8, %v2164_v46  ;;  %v1282_v46 = vpop.permute.xlu0 %1281 }
 0x1c9   : > { %v1011_v15 = vpop.f32.mrf.mxu0  ;;  %v1090_v16 = vpop.f32.mrf.mxu1 }
 0x1ca   : > { %v1024_v30 = vadd.f32 %v1011_v15, %v907_v63  ;;  %v1139_v50 = vadd.f32 %v1090_v16, %v1022_v59 }
 0x1cc   : > { %v1141_v36 = vadd.f32 %v1128_v27, %v1024_v30  ;;  %v911_v30 = vadd.f32 %v2162_v45, %v2166_v48 }
 0x1ce   : > { %v1112_v18 = vpop.f32.mrf.mxu2 }
 0x1d1   : > { %v1014_v19 = vpop.f32.mrf.mxu0  ;;  %v1093_v20 = vpop.f32.mrf.mxu1 }
 0x1d2   : > { %v1027_v2 = vadd.f32 %v1014_v19, %v910_v51  ;;  %v1133_v19 = vpop.f32.mrf.mxu3 }
 0x1d4   : > { %v1144_v21 = vadd.f32 %v1131_v52, %v1027_v2  ;;  %v1319_v52 = vld [vmem:[%s2269_s4] sm:$0x1] }
 0x1d6   : > { %v2180_v22 = vpop.f32.mrf.mxu2 }
 0x1d9   : > { %v1016_v23 = vpop.f32.mrf.mxu0  ;;  %v2182_v24 = vpop.f32.mrf.mxu1 }
 0x1da   : > { %v1030_v26 = vadd.f32 %v1016_v23, %v913_v14  ;;  %v1029_v23 = vadd.f32 %v2178_v17, %v912_v3 }
 0x1dc   : > { %v1147_v8 = vadd.f32 %v1133_v19, %v1030_v26  ;;  %v1146_v49 = vadd.f32 %v2180_v22, %v1029_v23 }
 0x1de   : > { %v1243_v28 = vpop.f32.mrf.mxu2 }
 0x1df   : > { %v1255_v33 = vadd.f32 %v1243_v28, %v1138_v29 }
 0x1e1   : > { %v1205_v31 = vpop.f32.mrf.mxu0  ;;  %v1224_v32 = vpop.f32.mrf.mxu1  ;;  %v1291_v44 = vadd.f32 %v1272_v35, %v1255_v33  ;;  %v1028_v33 = vadd.f32 %v2174_v6, %v911_v30 }
 0x1e2   : > { %v1253_v40 = vadd.f32 %v1205_v31, %v1136_v34  ;;  %v1254_v41 = vadd.f32 %v1224_v32, %v1137_v10  ;;  %v1143_v31 = vadd.f32 %v1112_v18, %v1026_v37  ;;  %v1142_v32 = vadd.f32 %v1093_v20, %v2170_v1 }
 0x1e3   : > { %v1303_v61 = vmax.f32 %v1291_v44, 0.0  ;;  %v1145_v7 = vadd.f32 %v2182_v24, %v1028_v33 }
 0x1e4   : > { %v1289_v56 = vadd.f32 %v1272_v35, %v1253_v40  ;;  %v1290_v57 = vadd.f32 %v1272_v35, %v1254_v41 }
 0x1e6   : > { %v1245_v42 = vpop.f32.mrf.mxu2  ;;  %v1301_v9 = vmax.f32 %v1289_v56, 0.0  ;;  %v1302_v10 = vmax.f32 %v1290_v57, 0.0 }
 0x1e7   : > { %v1258_v47 = vadd.f32 %v1245_v42, %v1141_v36 }
 0x1e9   : > { %v1294_v53 = vadd.f32 %v1277_v43, %v1258_v47  ;;  %v1207_v54 = vpop.f32.mrf.mxu0  ;;  %v1226_v55 = vpop.f32.mrf.mxu1 }
 0x1ea   : > { %v1256_v58 = vadd.f32 %v1207_v54, %v1139_v50  ;;  %v1257_v60 = vadd.f32 %v1226_v55, %v1140_v38 }
 0x1eb   : > { %v1306_v62 = vmax.f32 %v1294_v53, 0.0 }
 0x1ec   : > { %v1292_v63 = vadd.f32 %v1277_v43, %v1256_v58  ;;  %v1293_v0 = vadd.f32 %v1277_v43, %v1257_v60 }
 0x1ed   : > { %v1315_v5 = vpack.c.bf16 %v1306_v62, %v1303_v61 }
 0x1ee   : > { %v1304_v12 = vmax.f32 %v1292_v63, 0.0  ;;  %v1305_v59 = vmax.f32 %v1293_v0, 0.0  ;;  %v1248_v13 = vpop.f32.mrf.mxu2 }
 0x1ef   : > { %v1261_v29 = vadd.f32 %v1248_v13, %v1144_v21 }
 0x1f0   : > { %v1313_v15 = vpack.c.bf16 %v1304_v12, %v1301_v9  ;;  %v1314_v16 = vpack.c.bf16 %v1305_v59, %v1302_v10 }
 0x1f1   : > { %v1210_v27 = vpop.f32.mrf.mxu0  ;;  %v1229_v28 = vpop.f32.mrf.mxu1  ;;  %v1297_v11 = vadd.f32 %v1282_v46, %v1261_v29 }
 0x1f2   : > { %v1259_v34 = vadd.f32 %v1210_v27, %v1142_v32  ;;  %v1260_v35 = vadd.f32 %v1229_v28, %v1143_v31 }
 0x1f3   : > { %v1309_v6 = vmax.f32 %v1297_v11, 0.0 }
 0x1f4   : > { %v1295_v1 = vadd.f32 %v1282_v46, %v1259_v34  ;;  %v1296_v20 = vadd.f32 %v1282_v46, %v1260_v35 }
 0x1f6   : > { %v1250_v4 = vpop.f32.mrf.mxu2  ;;  %v1307_v44 = vmax.f32 %v1295_v1, 0.0  ;;  %v1308_v47 = vmax.f32 %v1296_v20, 0.0 }
 0x1f7   : > { %v1264_v36 = vadd.f32 %v1250_v4, %v1147_v8 }
 0x1f9   : > { %v1300_v45 = vadd.f32 %v2184_v25, %v1264_v36  ;;  %v1212_v48 = vpop.f32.mrf.mxu0  ;;  %v1231_v18 = vpop.f32.mrf.mxu1 }
 0x1fa   : > { %v1262_v39 = vadd.f32 %v1212_v48, %v1145_v7  ;;  %v1263_v40 = vadd.f32 %v1231_v18, %v1146_v49  ;;  %v1427_v7 = vstv %s251_s20 }
 0x1fb   : > { %v1312_v41 = vmax.f32 %v1300_v45, 0.0 }
 0x1fc   : > { %v1298_v17 = vadd.f32 %v2184_v25, %v1262_v39  ;;  %v1299_v42 = vadd.f32 %v2184_v25, %v1263_v40  ;;  %v1324_v25 = vpop.permute.xlu2 %1323  ;;  %v1440_v39 = vlaneseq }
 0x1fd   : > { %v1318_v43 = vpack.c.bf16 %v1312_v41, %v1309_v6  ;;  %v1326_v54 = vperm.slane %v1324_v25, 0 }
 0x1fe   : > { %v1310_v22 = vmax.f32 %v1298_v17, 0.0  ;;  %v1311_v38 = vmax.f32 %v1299_v42, 0.0  ;;  %vm2223_vm8 = vcmp.ge.s32.totalorder %v1440_v39, 68  ;;  %vm2227_vm9 = vcmp.lt.s32.totalorder %v1440_v39, 128 }
 0x1ff   : > { %1363 = vmatpush.bf16.msrb.mxu0 %v1318_v43 }
 0x200   : > { %v1316_v24 = vpack.c.bf16 %v1310_v22, %v1307_v44  ;;  %v1317_v50 = vpack.c.bf16 %v1311_v38, %v1308_v47 }
 0x202   : > { %1337 = vmatpush.bf16.msra.mxu3 %v1316_v24 }
 0x203   : > { %1364 = vmatpush.bf16.msrb.mxu0 %v1315_v5 }
 0x206   : > { %1338 = vmatpush.bf16.msra.mxu3 %v1313_v15  ;;  %1688 = vmatmul.msk.bf16.vlgmr.msrb.gmra.mxu0 %vm1327_vm10, %v1319_v52 }
 0x209   : > { %1686 = vmatmul.msk.bf16.vlgmr.msra.gmra.mxu3 %vm1327_vm10, %v1319_v52 }
 0x20a   : > { %1350 = vmatpush.bf16.msrb.mxu3 %v1317_v50 }
 0x20e   : > { %1351 = vmatpush.bf16.msrb.mxu3 %v1314_v16 }
 0x219   : > { %1687 = vmatmul.msk.bf16.vlgmr.msrb.gmra.mxu3 %vm1327_vm10, %v1319_v52  ;;  %vm1437_vm10 = vcmask 1041408   ;;  %v1852_v52 = vmov 0.0  }
 0x283   : > { %v1366_v53 = vpop.f32.mrf.mxu0 }
 0x284   : > { %v1367_v55 = vadd.f32 %v1366_v53, %v1326_v54 }
 0x286   : > { %v1691_v56 = vmul.f32 -1.442695, %v1367_v55 }
 0x288   : > { %1767 = vpow2.f32 %v1691_v56 }
 0x28b   : > { %v1368_v57 = vpop.f32.mrf.mxu0 }
 0x28c   : > { %v1340_v58 = vpop.f32.mrf.mxu3 }
 0x28d   : > { %v1341_v60 = vadd.f32 %v1340_v58, %v1326_v54 }
 0x28e   : > { %v1768_v61 = vpop.eup %1767 }
 0x28f   : > { %v1689_v51 = vmul.f32 -1.442695, %v1341_v60  ;;  %v1381_v63 = vadd.f32 1.0, %v1768_v61 }
 0x291   : > { %1769 = vpow2.f32 %v1689_v51  ;;  %v1423_v37 = vand.u32 2147483648, %v1381_v63  ;;  %vm1417_vm12 = vweird.f32 %v1381_v63  ;;  %v1421_v31 = vand.u32 2147483647, %v1381_v63 }
 0x292   : > { %1771 = vrcp.f32 %v1381_v63 }
 0x293   : > { %v1424_v46 = vor.u32 1.1754944e-38, %v1423_v37  ;;  %vm1422_vm3 = vcmp.eq.f32.partialorder %v1421_v31, 8.507059e+37 }
 0x294   : > { %v1342_v62 = vpop.f32.mrf.mxu3 }
 0x297   : > { %v1770_v0 = vpop.eup %1769 }
 0x298   : > { %v1379_v2 = vadd.f32 1.0, %v1770_v0  ;;  %v1772_v12 = vpop.eup %1771 }
 0x299   : > { %v1413_v13 = vmul.f32 %v1772_v12, %v1381_v63  ;;  %vm1418_vm11 = vweird.f32 %v1772_v12 }
 0x29a   : > { %1773 = vrcp.f32 %v1379_v2  ;;  %vm2205_vm13 = vmor %vm1417_vm12, %vm1418_vm11  ;;  %vm1387_vm15 = vweird.f32 %v1379_v2  ;;  %v1393_v23 = vand.u32 2147483648, %v1379_v2  ;;  %v1391_v4 = vand.u32 2147483647, %v1379_v2 }
 0x29b   : > { %v1414_v21 = vsub.f32 1.0, %v1413_v13  ;;  %vm1442_vm11 = vcmp.lt.s32.totalorder %v1440_v39, 324  ;;  %vm1447_vm12 = vmand %vm2223_vm8, %vm2227_vm9 }
 0x29c   : > { %v1353_v5 = vpop.f32.mrf.mxu3  ;;  %v1394_v1 = vor.u32 1.1754944e-38, %v1393_v23  ;;  %vm1392_vm6 = vcmp.eq.f32.partialorder %v1391_v4, 8.507059e+37 }
 0x29d   : > { %v1354_v9 = vadd.f32 %v1353_v5, %v1326_v54  ;;  %v1415_v28 = vmul.f32 %v1772_v12, %v1414_v21 }
 0x29f   : > { %v1690_v10 = vmul.f32 -1.442695, %v1354_v9  ;;  %v1416_v29 = vadd.f32 %v1772_v12, %v1415_v28 }
 0x2a0   : > { %v1774_v59 = vpop.eup %1773 }
 0x2a1   : > { %1775 = vpow2.f32 %v1690_v10  ;;  %v1383_v16 = vmul.f32 %v1774_v59, %v1379_v2  ;;  %vm1388_vm14 = vweird.f32 %v1774_v59  ;;  %v1420_v35 = vsel %vm2205_vm13, %v1772_v12, %v1416_v29 }
 0x2a2   : > { %vm2213_vm2 = vmor %vm1387_vm15, %vm1388_vm14  ;;  %v1425_v18 = vsel %vm1422_vm3, %v1424_v46, %v1420_v35 }
 0x2a3   : > { %v1384_v27 = vsub.f32 1.0, %v1383_v16  ;;  %v1430_v17 = vmul.f32 %v1427_v7, %v1425_v18 }
 0x2a4   : > { %v1355_v14 = vpop.f32.mrf.mxu3 }
 0x2a5   : > { %v1385_v3 = vmul.f32 %v1774_v59, %v1384_v27  ;;  %v1435_v38 = vrot.slane %v1430_v17, 6 }
 0x2a7   : > { %v1776_v15 = vpop.eup %1775  ;;  %v1386_v8 = vadd.f32 %v1774_v59, %v1385_v3 }
 0x2a8   : > { %v1380_v26 = vadd.f32 1.0, %v1776_v15 }
 0x2a9   : > { %v1390_v48 = vsel %vm2213_vm2, %v1774_v59, %v1386_v8 }
 0x2aa   : > { %1777 = vrcp.f32 %v1380_v26  ;;  %v1408_v34 = vand.u32 2147483648, %v1380_v26  ;;  %v1406_v36 = vand.u32 2147483647, %v1380_v26  ;;  %vm1402_vm4 = vweird.f32 %v1380_v26 }
 0x2ab   : > { %v1395_v6 = vsel %vm1392_vm6, %v1394_v1, %v1390_v48 }
 0x2ac   : > { %v1409_v20 = vor.u32 1.1754944e-38, %v1408_v34  ;;  %vm1407_vm7 = vcmp.eq.f32.partialorder %v1406_v36, 8.507059e+37  ;;  %v1428_v47 = vmul.f32 %v1427_v7, %v1395_v6 }
 0x2b0   : > { %v1778_v19 = vpop.eup %1777 }
 0x2b1   : > { %v1398_v30 = vmul.f32 %v1778_v19, %v1380_v26  ;;  %vm1403_vm1 = vweird.f32 %v1778_v19 }
 0x2b2   : > { %vm1404_vm5 = vmor %vm1402_vm4, %vm1403_vm1 }
 0x2b3   : > { %v1399_v33 = vsub.f32 1.0, %v1398_v30 }
 0x2b5   : > { %v1400_v11 = vmul.f32 %v1778_v19, %v1399_v33 }
 0x2b7   : > { %v1401_v45 = vadd.f32 %v1778_v19, %v1400_v11 }
 0x2b9   : > { %v1405_v40 = vsel %vm1404_vm5, %v1778_v19, %v1401_v45 }
 0x2ba   : > { %v1410_v41 = vsel %vm1407_vm7, %v1409_v20, %v1405_v40 }
 0x2bb   : > { %v1429_v42 = vmul.f32 %v1427_v7, %v1410_v41 }
 0x2bd   : > { %v1434_v22 = vrot.slane %v1429_v42, 7 }
 0x2bf   : > { %v1436_v24 = vsel %vm296_vm0, %v1428_v47, %v1434_v22 }
 0x2c0   : > { %v1438_v50 = vsel %vm1437_vm10, %v1436_v24, %v1435_v38 }
 0x2c1   : > { %1444 = vst.msk [vmem:[%s245_s5] sm:$0x7] %vm1442_vm11, %v1438_v50 }
 0x2c2   : > { %1448 = vst.msk [vmem:[%s245_s5 + $0x2] sm:$0x1] %vm1447_vm12, %v1852_v52 }
 0x2c3   : > { %1806 = shalt.err (!%p1803_p3)
}
 0x2c4   : > { %1715 = dma.vmem_to_hbm [thread:$0]  (%p1932_p5), %s1463_s30, 48, %s1465_s7, %s1450_s11  }
 0x2c5 PF: > { %p1721_p4 = scmp.ge.s32.totalorder %s1841_s28, 2  ;;  %s1476_s20 = sand.u32 1, %s1829_s25  }
 0x2c6   : > { %s1477_s15 = scalar_lea.sflag [#allocation5], %s1476_s20 }
 0x2c7   : > { %p1718_p7 = pnand %p1721_p4, %p1936_p6 }
 0x2c9   : > { %p1719_p8 = pneg %p1718_p7 }
 0x2cb   : > { %1824 = dma.done.wait (%p1719_p8), %s1477_s15, 48  }
 0x2cc   : > { %1826 = vsyncadd (%p1719_p8), %s1477_s15, 4294967248  ;;  %p19_p9 = scmp.ge.s32.totalorder %s1919_s29, 4   ;;  %s2282_s25 = smov %s1833_s26 }
 0x2cd   : > { %s2283_s26 = smov %s1837_s27  ;;  %s2284_s27 = smov %s1930_s8 }
 0x2ce   : > { %s2285_s28 = smov %s1919_s29  ;;  %21 = sbr.rel (!%p19_p9) target bundleno = 6 (0x6), region = 87 }
 0x2d3   :  { %1483 = vsyncpa [#allocation5], 1 }
 0x2d4   :  { %1485 = vsyncpa [#allocation5 + $0x1], 1 }

</bundles_post_ra>
